<compile_context>
chip_gen: v6e
topology: v6e:2x2x1
jax: 0.10.0
libtpu: 0.0.40
codegen_flags: <defaults>
</compile_context>

<pallas_src>
import jax
import jax.numpy as jnp
from jax.experimental import pallas as pl
from jax.experimental.pallas import tpu as pltpu

# Hidden dims fixed by the module: input -> 256 -> 128 -> 64 -> 2
_H0, _H1, _H2, _NOUT = 256, 128, 64, 2
_LANE = 128
# Packed-bias layout (128-aligned slot offsets): b0[0:256] b1[256:384] b2[384:448] b3[512:512+n_out]
_B0_OFF, _B1_OFF, _B2_OFF, _B3_OFF = 0, 256, 384, 512
_B3_SLOT = 128                      # max n_out the packed layout supports
_B_PACKED_W = 640


def _mlp_kernel(x_ref, w0_ref, w1_ref, w2_ref, w3_ref, b_ref, o_ref):
    n_out = o_ref.shape[-1]
    # Static slices of the single packed f32 bias buffer (128-aligned offsets).
    b0 = b_ref[:, _B0_OFF:_B0_OFF + _H0]
    b1 = b_ref[:, _B1_OFF:_B1_OFF + _H1]
    b2 = b_ref[:, _B2_OFF:_B2_OFF + _H2]
    b3 = b_ref[:, _B3_OFF:_B3_OFF + n_out]

    # fc0 + tanh   (x and weights are bf16 -> MXU-native; accumulate in f32)
    h = jnp.dot(x_ref[...], w0_ref[...], preferred_element_type=jnp.float32)
    h = jnp.tanh(h + b0)
    # fc1 + relu   (dropout1: identity at inference)
    h = jnp.dot(h.astype(jnp.bfloat16), w1_ref[...],
                preferred_element_type=jnp.float32)
    h = jnp.maximum(h + b1, 0.0)
    # fc2 + relu   (dropout2: identity at inference)
    h = jnp.dot(h.astype(jnp.bfloat16), w2_ref[...],
                preferred_element_type=jnp.float32)
    h = jnp.maximum(h + b2, 0.0)
    # fc3 -> compact (tile_b, n_out) store (no 128-column padding / write amplification)
    h = jnp.dot(h.astype(jnp.bfloat16), w3_ref[...],
                preferred_element_type=jnp.float32)
    o_ref[...] = (h + b3).astype(o_ref.dtype)


def _round_up(n, m):
    return ((n + m - 1) // m) * m


def _choose_tile_b(batch):
    """Pick the batch-tile size (rows)."""
    if batch <= 128:
        # Tiny batch: single tile; bf16 sublane packing only needs a multiple of 16
        # rows, so don't pad all the way to 128 (8x wasted MXU/DMA work otherwise).
        return _round_up(max(batch, 1), 16)
    if batch <= 256:
        return 128
    # Large batch: biggest 128-multiple tile that still leaves >= 2 tiles so both
    # v7x TensorCores get work; bigger tiles amortize the ~0.35 us per-step overhead.
    for t in (2048, 1024, 512, 256, 128):
        if batch >= 2 * t:
            return t
    return 128


def _vmem_limit_bytes(tile_b, d, n_out):
    """Size the scoped-VMEM limit from actual usage instead of a flat 32 MiB."""
    bf16, f32 = 2, 4
    rl = lambda n: _round_up(n, _LANE)   # lane-padded VMEM footprint
    resident = ((d * _H0 + _H0 * _H1 + _H1 * _H2 + _H2 * rl(n_out)) * bf16
                + _B_PACKED_W * f32)
    x_tile = tile_b * rl(d) * bf16
    o_tile = tile_b * rl(n_out) * f32
    acts = tile_b * (rl(_H0) + rl(_H1) + rl(_H2) + rl(n_out)) * (f32 + bf16)
    est = 2 * (resident + x_tile + o_tile) + acts     # x2 for default double-buffering
    return max(8 << 20, min(int(est * 1.5) + (2 << 20), 40 << 20))


def nn_regressor_forward(x, params):
    """x: (B, input_size) float32. params: w{i} of shape (in, out), b{i} of shape (1, out)."""
    B, D = x.shape
    w0, b0 = params["w0"], params["b0"]
    w1, b1 = params["w1"], params["b1"]
    w2, b2 = params["w2"], params["b2"]
    w3, b3 = params["w3"], params["b3"]
    n_out = w3.shape[1]

    assert w0.shape[1] == _H0 and w1.shape == (_H0, _H1)
    assert w2.shape == (_H1, _H2) and w3.shape[0] == _H2
    assert n_out <= _B3_SLOT, "packed-bias layout supports at most 128 output columns"

    # --- bf16 MXU operands (f32 accumulation stays inside the kernel) ---
    x_bf = x.astype(jnp.bfloat16)
    w0b, w1b = w0.astype(jnp.bfloat16), w1.astype(jnp.bfloat16)
    w2b, w3b = w2.astype(jnp.bfloat16), w3.astype(jnp.bfloat16)

    # --- pack the four f32 biases into one (1, 640) buffer (single DMA descriptor) ---
    b_packed = jnp.zeros((1, _B_PACKED_W), jnp.float32)
    b_packed = b_packed.at[:, _B0_OFF:_B0_OFF + _H0].set(b0)
    b_packed = b_packed.at[:, _B1_OFF:_B1_OFF + _H1].set(b1)
    b_packed = b_packed.at[:, _B2_OFF:_B2_OFF + _H2].set(b2)
    b_packed = b_packed.at[:, _B3_OFF:_B3_OFF + n_out].set(b3)

    # --- batch tiling ---
    tile_b = _choose_tile_b(B)
    n_tiles = pl.cdiv(B, tile_b)
    b_pad = n_tiles * tile_b
    if b_pad != B:
        x_bf = jnp.pad(x_bf, ((0, b_pad - B), (0, 0)))

    def resident(shape):
        # Constant block index => weights/biases stay VMEM-resident across grid steps.
        return pl.BlockSpec(shape, lambda i: (0, 0))

    out = pl.pallas_call(
        _mlp_kernel,
        out_shape=jax.ShapeDtypeStruct((b_pad, n_out), jnp.float32),
        grid=(n_tiles,),
        in_specs=[
            pl.BlockSpec((tile_b, D), lambda i: (i, 0)),     # x: streamed per tile
            resident(w0b.shape),
            resident(w1b.shape),
            resident(w2b.shape),
            resident(w3b.shape),
            resident(b_packed.shape),
        ],
        # Compact store: block last dim equals the full output width (n_out).
        out_specs=pl.BlockSpec((tile_b, n_out), lambda i: (i, 0)),
        compiler_params=pltpu.CompilerParams(
            # Batch tiles are independent -> shard across v7x's 2 TensorCores.
            dimension_semantics=("parallel",),
            vmem_limit_bytes=_vmem_limit_bytes(tile_b, D, n_out),
        ),
    )(x_bf, w0b, w1b, w2b, w3b, b_packed)

    return out[:B] if b_pad != B else out


def init_params(key, input_size):
    """Deterministic init mirroring nn.Linear default (uniform +/- 1/sqrt(fan_in))."""
    dims = [(input_size, _H0), (_H0, _H1), (_H1, _H2), (_H2, _NOUT)]
    params = {}
    for i, (fan_in, fan_out) in enumerate(dims):
        key, kw, kb = jax.random.split(key, 3)
        bound = 1.0 / jnp.sqrt(float(fan_in))
        params[f"w{i}"] = jax.random.uniform(
            kw, (fan_in, fan_out), jnp.float32, -bound, bound)
        params[f"b{i}"] = jax.random.uniform(
            kb, (1, fan_out), jnp.float32, -bound, bound)
    return params


def reference_forward(x, p):
    h = jnp.tanh(x @ p["w0"] + p["b0"])
    h = jnp.maximum(h @ p["w1"] + p["b1"], 0.0)
    h = jnp.maximum(h @ p["w2"] + p["b2"], 0.0)
    return h @ p["w3"] + p["b3"]


if __name__ == "__main__":
    key = jax.random.PRNGKey(0)
    input_size = 32
    batch = 16

    kx, kp = jax.random.split(key)
    x = jax.random.normal(kx, (batch, input_size), jnp.float32)
    params = init_params(kp, input_size)

    out = nn_regressor_forward(x, params)
    out = jax.block_until_ready(out)

    ref = reference_forward(x, params)
    assert out.shape == (batch, _NOUT)
    # bf16 MXU operands with f32 accumulation -> loosened tolerance vs f32 reference.
    assert jnp.allclose(out, ref, atol=5e-2, rtol=5e-2), "mismatch vs reference"

    print("KERNEL_OK")
</pallas_src>

<mosaic_0001>
module attributes {stable_mosaic.version = 11 : i64} {
  func.func @_mlp_kernel(%arg0: i32, %arg1: memref<16x32xbf16, #tpu.memory_space<vmem>>, %arg2: memref<32x256xbf16, #tpu.memory_space<vmem>>, %arg3: memref<256x128xbf16, #tpu.memory_space<vmem>>, %arg4: memref<128x64xbf16, #tpu.memory_space<vmem>>, %arg5: memref<64x2xbf16, #tpu.memory_space<vmem>>, %arg6: memref<1x640xf32, #tpu.memory_space<vmem>>, %arg7: memref<16x2xf32, #tpu.memory_space<vmem>>) attributes {dimension_semantics = [#tpu.dimension_semantics<parallel>], iteration_bounds = array<i64: 1>, scalar_prefetch = 0 : i64, scratch_operands = 0 : i64, tpu.core_type = #tpu.core_type<tc>, window_params = [{transform_indices = @transform_0, window_bounds = array<i64: 16, 32>}, {pipeline_mode = #tpu.pipeline_mode<synchronous>, transform_indices = @transform_1, window_bounds = array<i64: 32, 256>}, {pipeline_mode = #tpu.pipeline_mode<synchronous>, transform_indices = @transform_2, window_bounds = array<i64: 256, 128>}, {pipeline_mode = #tpu.pipeline_mode<synchronous>, transform_indices = @transform_3, window_bounds = array<i64: 128, 64>}, {pipeline_mode = #tpu.pipeline_mode<synchronous>, transform_indices = @transform_4, window_bounds = array<i64: 64, 2>}, {pipeline_mode = #tpu.pipeline_mode<synchronous>, transform_indices = @transform_5, window_bounds = array<i64: 1, 640>}, {transform_indices = @transform_6, window_bounds = array<i64: 16, 2>}]} {
    %c0 = arith.constant 0 : index
    %c0_0 = arith.constant 0 : index
    %0 = vector.load %arg6[%c0, %c0_0] : memref<1x640xf32, #tpu.memory_space<vmem>>, vector<1x256xf32>
    %c0_1 = arith.constant 0 : index
    %c256 = arith.constant 256 : index
    %1 = vector.load %arg6[%c0_1, %c256] : memref<1x640xf32, #tpu.memory_space<vmem>>, vector<1x128xf32>
    %c0_2 = arith.constant 0 : index
    %c384 = arith.constant 384 : index
    %2 = vector.load %arg6[%c0_2, %c384] : memref<1x640xf32, #tpu.memory_space<vmem>>, vector<1x64xf32>
    %c0_3 = arith.constant 0 : index
    %c512 = arith.constant 512 : index
    %3 = vector.load %arg6[%c0_3, %c512] : memref<1x640xf32, #tpu.memory_space<vmem>>, vector<1x2xf32>
    %c0_4 = arith.constant 0 : index
    %c0_5 = arith.constant 0 : index
    %4 = vector.load %arg1[%c0_4, %c0_5] : memref<16x32xbf16, #tpu.memory_space<vmem>>, vector<16x32xbf16>
    %c0_6 = arith.constant 0 : index
    %c0_7 = arith.constant 0 : index
    %5 = vector.load %arg2[%c0_6, %c0_7] : memref<32x256xbf16, #tpu.memory_space<vmem>>, vector<32x256xbf16>
    %cst = arith.constant dense<0.000000e+00> : vector<16x256xf32>
    %6 = tpu.matmul %4, %5, %cst {dimension_numbers = #tpu.dot_dimension_numbers<[1], [0], [0], [1], [0, 0, 1, 1], [], []>} : vector<16x32xbf16>, vector<32x256xbf16>, vector<16x256xf32> -> vector<16x256xf32>
    %7 = vector.broadcast %0 : vector<1x256xf32> to vector<16x256xf32>
    %8 = arith.addf %6, %7 : vector<16x256xf32>
    %9 = math.tanh %8 : vector<16x256xf32>
    %10 = arith.truncf %9 : vector<16x256xf32> to vector<16x256xbf16>
    %c0_8 = arith.constant 0 : index
    %c0_9 = arith.constant 0 : index
    %11 = vector.load %arg3[%c0_8, %c0_9] : memref<256x128xbf16, #tpu.memory_space<vmem>>, vector<256x128xbf16>
    %cst_10 = arith.constant dense<0.000000e+00> : vector<16x128xf32>
    %12 = tpu.matmul %10, %11, %cst_10 {dimension_numbers = #tpu.dot_dimension_numbers<[1], [0], [0], [1], [0, 0, 1, 1], [], []>} : vector<16x256xbf16>, vector<256x128xbf16>, vector<16x128xf32> -> vector<16x128xf32>
    %13 = vector.broadcast %1 : vector<1x128xf32> to vector<16x128xf32>
    %14 = arith.addf %12, %13 : vector<16x128xf32>
    %cst_11 = arith.constant 0.000000e+00 : f32
    %15 = vector.broadcast %cst_11 : f32 to vector<16x128xf32>
    %16 = arith.maximumf %14, %15 : vector<16x128xf32>
    %17 = arith.truncf %16 : vector<16x128xf32> to vector<16x128xbf16>
    %c0_12 = arith.constant 0 : index
    %c0_13 = arith.constant 0 : index
    %18 = vector.load %arg4[%c0_12, %c0_13] : memref<128x64xbf16, #tpu.memory_space<vmem>>, vector<128x64xbf16>
    %cst_14 = arith.constant dense<0.000000e+00> : vector<16x64xf32>
    %19 = tpu.matmul %17, %18, %cst_14 {dimension_numbers = #tpu.dot_dimension_numbers<[1], [0], [0], [1], [0, 0, 1, 1], [], []>} : vector<16x128xbf16>, vector<128x64xbf16>, vector<16x64xf32> -> vector<16x64xf32>
    %20 = vector.broadcast %2 : vector<1x64xf32> to vector<16x64xf32>
    %21 = arith.addf %19, %20 : vector<16x64xf32>
    %cst_15 = arith.constant 0.000000e+00 : f32
    %22 = vector.broadcast %cst_15 : f32 to vector<16x64xf32>
    %23 = arith.maximumf %21, %22 : vector<16x64xf32>
    %24 = arith.truncf %23 : vector<16x64xf32> to vector<16x64xbf16>
    %c0_16 = arith.constant 0 : index
    %c0_17 = arith.constant 0 : index
    %25 = vector.load %arg5[%c0_16, %c0_17] : memref<64x2xbf16, #tpu.memory_space<vmem>>, vector<64x2xbf16>
    %cst_18 = arith.constant dense<0.000000e+00> : vector<16x2xf32>
    %26 = tpu.matmul %24, %25, %cst_18 {dimension_numbers = #tpu.dot_dimension_numbers<[1], [0], [0], [1], [0, 0, 1, 1], [], []>} : vector<16x64xbf16>, vector<64x2xbf16>, vector<16x2xf32> -> vector<16x2xf32>
    %27 = vector.broadcast %3 : vector<1x2xf32> to vector<16x2xf32>
    %28 = arith.addf %26, %27 : vector<16x2xf32>
    %c0_19 = arith.constant 0 : index
    %c0_20 = arith.constant 0 : index
    %29 = vector.load %arg7[%c0_19, %c0_20] : memref<16x2xf32, #tpu.memory_space<vmem>>, vector<16x2xf32>
    tpu.vector_store %arg7[%c0_19, %c0_20], %28 {strides = array<i32>} : memref<16x2xf32, #tpu.memory_space<vmem>>, vector<16x2xf32>,
    return
  }
  func.func @transform_0(%arg0: i32) -> (i32, i32) {
    %c0_i32 = arith.constant 0 : i32
    %c0_i32_0 = arith.constant 0 : i32
    return %arg0, %c0_i32 : i32, i32
  }
  func.func @transform_1(%arg0: i32) -> (i32, i32) {
    %c0_i32 = arith.constant 0 : i32
    %c0_i32_0 = arith.constant 0 : i32
    %c0_i32_1 = arith.constant 0 : i32
    return %c0_i32, %c0_i32_0 : i32, i32
  }
  func.func @transform_2(%arg0: i32) -> (i32, i32) {
    %c0_i32 = arith.constant 0 : i32
    %c0_i32_0 = arith.constant 0 : i32
    %c0_i32_1 = arith.constant 0 : i32
    return %c0_i32, %c0_i32_0 : i32, i32
  }
  func.func @transform_3(%arg0: i32) -> (i32, i32) {
    %c0_i32 = arith.constant 0 : i32
    %c0_i32_0 = arith.constant 0 : i32
    %c0_i32_1 = arith.constant 0 : i32
    return %c0_i32, %c0_i32_0 : i32, i32
  }
  func.func @transform_4(%arg0: i32) -> (i32, i32) {
    %c0_i32 = arith.constant 0 : i32
    %c0_i32_0 = arith.constant 0 : i32
    %c0_i32_1 = arith.constant 0 : i32
    return %c0_i32, %c0_i32_0 : i32, i32
  }
  func.func @transform_5(%arg0: i32) -> (i32, i32) {
    %c0_i32 = arith.constant 0 : i32
    %c0_i32_0 = arith.constant 0 : i32
    %c0_i32_1 = arith.constant 0 : i32
    return %c0_i32, %c0_i32_0 : i32, i32
  }
  func.func @transform_6(%arg0: i32) -> (i32, i32) {
    %c0_i32 = arith.constant 0 : i32
    %c0_i32_0 = arith.constant 0 : i32
    return %arg0, %c0_i32 : i32, i32
  }
}

</mosaic_0001>

<bundles_post_ra>
// kernel: tpu_custom_call.1
= control target key start
LH: loop header
LB: loop body
LE: loop exit
PB: predicated region body
PF: predicated region fallthrough
CT: control target
= control target key end

     0   :  { %11 = vsyncpa [#allocation3], 0  ;;  %s903_s0 = inlined_call_operand.hbm [shape: bf16[16,32], index: 0, kind: input, shape index: {}]   ;;  %s904_s1 = inlined_call_operand.hbm [shape: bf16[32,256], index: 1, kind: input, shape index: {}]   ;;  %s905_s2 = inlined_call_operand.vmem [shape: bf16[256,128], index: 2, kind: input, shape index: {}]   ;;  %s906_s3 = inlined_call_operand.vmem [shape: bf16[128,64], index: 3, kind: input, shape index: {}]   ;;  %s907_s4 = inlined_call_operand.vmem [shape: bf16[64,2], index: 4, kind: input, shape index: {}]   ;;  %s908_s5 = inlined_call_operand.vmem [shape: f32[1,640], index: 5, kind: input, shape index: {}]   ;;  %s909_s6 = inlined_call_operand.vmem [shape: f32[16,2], index: 6, kind: output, shape index: {}]  }
   0x1   :  { %12 = vsyncpa [#allocation5], 0  ;;  %s737_s21 = smov [#allocation2]  }
   0x2   :  { %s18_s22 = sshll.u32 %s737_s21, 4  ;;  %s19_s22 = int_to_ptr.vmem [resolvable:$true] %s18_s22 }
   0x3   :  { %s701_s23 = scalar_lea.vmem %s19_s22, 128  ;;  %p706_p1 = scmp.lt.s32.totalorder %s19_s22, %s19_s22 }
   0x4   :  { %p702_p0 = scmp.ne.s32.totalorder %s19_s22, %s701_s23  ;;  %p707_p2 = scmp.lt.s32.totalorder %s701_s23, %s701_s23 }
   0x6   :  { %p708_p3 = por %p707_p2, %p706_p1 }
   0x8   :  { %p709_p4 = pnand %p708_p3, %p702_p0 }
   0xa   :  { %712 = shalt.err (!%p709_p4)
}
   0xb   :  { %s738_s24 = smov 64   ;;  %s739_s25 = smov 4  }
   0xc   :  { %24 = dma.hbm_to_vmem [thread:$0]  %s903_s0, 128, %s19_s22, [#allocation3], %s738_s24, %s738_s24, %s739_s25  }
   0xd   :  { %s740_s28 = smov [#allocation4]  }
   0xe   :  { %s30_s29 = sshll.u32 %s740_s28, 4  ;;  %s31_s29 = int_to_ptr.vmem [resolvable:$true] %s30_s29 }
   0xf   :  { %s721_s30 = scalar_lea.vmem %s31_s29, 512  ;;  %p726_p6 = scmp.lt.s32.totalorder %s31_s29, %s31_s29 }
  0x10   :  { %p722_p5 = scmp.ne.s32.totalorder %s31_s29, %s721_s30  ;;  %p727_p7 = scmp.lt.s32.totalorder %s721_s30, %s721_s30 }
  0x12   :  { %p728_p8 = por %p727_p7, %p726_p6 }
  0x14   :  { %p729_p9 = pnand %p728_p8, %p722_p5 }
  0x16   :  { %732 = shalt.err (!%p729_p9)
}
  0x17   :  { %s741_s7 = smov 128   ;;  %s742_s8 = smov 8  }
  0x18   :  { %36 = dma.hbm_to_vmem [thread:$0]  %s904_s1, 512, %s31_s29, [#allocation5], %s741_s7, %s741_s7, %s742_s8  }
  0x19   :  { %733 = dma.done.wait [#allocation3], 128  }
  0x1a   :  { %734 = vsyncadd [#allocation3], 4294967168 }
  0x1b   :  { %735 = dma.done.wait [#allocation5], 512  }
  0x1c   :  { %736 = vsyncadd [#allocation5], 4294966784  ;;  %v743_v0 = vmov 0   ;;  %v650_v1 = vld [vmem:[#allocation4 + $0x14] ss:$8 sps:$4 sm:$0xff]   ;;  %v659_v8 = vld [vmem:[%s905_s2 + $0x70] sm:$0xff]   ;;  %v63_v27 = vlaneseq }
  0x1d   :  { %134 = vmatprep.mubr.bf16.mxu0 %v743_v0  ;;  %v652_v2 = vld [vmem:[#allocation4 + $0x10] ss:$8 sps:$4 sm:$0xff]   ;;  %114 = vmatprep.subr.bf16.mxu0 %v650_v1  ;;  %v653_v3 = vld [vmem:[#allocation4 + $0x4] ss:$8 sps:$4 sm:$0xff]   ;;  %v655_v4 = vld [vmem:[#allocation4] ss:$8 sps:$4 sm:$0xff]  }
  0x1e   :  { %115 = vmatpush1.bf16.msra.mxu0 %v652_v2  ;;  %v656_v5 = vld [vmem:[#allocation2] sm:$0xff]   ;;  %v657_v6 = vld [vmem:[%s905_s2 + $0x78] sm:$0xff]   ;;  %vm98_vm0 = vcmask 261120   ;;  %v660_v9 = vld [vmem:[%s905_s2 + $0x30] sm:$0xff]   ;;  %v744_v23 = vmov 0.0   ;;  %v64_v28 = vshrl.u32 %v63_v27, 7 }
  0x1f   :  { %116 = vmatprep.subr.bf16.mxu0 %v653_v3  ;;  %v658_v7 = vld [vmem:[%s905_s2 + $0x38] sm:$0xff]   ;;  %573 = vmatprep.subr.bf16.mxu1 %v657_v6  ;;  %v661_v10 = vld [vmem:[%s905_s2 + $0x68] sm:$0xff]   ;;  %v663_v12 = vld [vmem:[%s905_s2 + $0x60] sm:$0xff]   ;;  %vm745_vm1 = vmmov 0   ;;  %vm481_vm2 = vcmask 523264   ;;  %vm526_vm3 = vcmask 15360  }
  0x20   :  { %574 = vmatpush3.bf16.msra.mxu1 %v658_v7  ;;  %v662_v11 = vld [vmem:[%s905_s2 + $0x28] sm:$0xff]   ;;  %v664_v13 = vld [vmem:[%s905_s2 + $0x20] sm:$0xff]   ;;  %v665_v14 = vld [vmem:[%s905_s2 + $0x58] sm:$0xff]   ;;  %v69_v29 = vsub.s32 1, %v64_v28  ;;  %v65_v31 = vsub.s32 0, %v64_v28 }
  0x21   :  { %575 = vmatprep.subr.bf16.mxu1 %v659_v8  ;;  %v666_v15 = vld [vmem:[%s905_s2 + $0x18] sm:$0xff]   ;;  %v667_v16 = vld [vmem:[%s905_s2 + $0x50] sm:$0xff]   ;;  %v669_v18 = vld [vmem:[%s905_s2 + $0x48] sm:$0xff]  }
  0x22   :  { %117 = vmatpush1.bf16.msra.mxu0 %v655_v4  ;;  %v668_v17 = vld [vmem:[%s905_s2 + $0x10] sm:$0xff]   ;;  %v670_v19 = vld [vmem:[%s905_s2 + $0x8] sm:$0xff]   ;;  %v671_v20 = vld [vmem:[%s905_s2 + $0x40] sm:$0xff]  }
  0x23   :  { %v672_v21 = vld [vmem:[%s905_s2] sm:$0xff]   ;;  %v673_v22 = vld [vmem:[%s906_s3 + $0x38] sm:$0xff]   ;;  %609 = vmatprep.subr.bf16.mxu0 %v744_v23  ;;  %v674_v24 = vld [vmem:[%s906_s3 + $0x30] sm:$0xff]  }
  0x24   :  { %576 = vmatpush3.bf16.msra.mxu1 %v660_v9  ;;  %v675_v25 = vld [vmem:[%s906_s3 + $0x28] sm:$0xff]   ;;  %v676_v26 = vld [vmem:[%s906_s3 + $0x20] sm:$0xff]   ;;  %v677_v48 = vld [vmem:[%s906_s3 + $0x18] sm:$0xff]  }
  0x25   :  { %540 = vmatmul.mubr.msk.bf16.vlgmr.msra.gmra.mxu0 %vm98_vm0, %v656_v5  ;;  %577 = vmatprep.subr.bf16.mxu1 %v661_v10  ;;  %v52_v30 = vld [vmem:[%s908_s5] sm:$0x3]  ;;  %v678_v49 = vld [vmem:[%s906_s3 + $0x10] sm:$0xff]   ;;  %v679_v50 = vld [vmem:[%s906_s3 + $0x8] sm:$0xff]  }
  0x26   :  { %610 = vmatpush3.bf16.msra.mxu0 %v673_v22  ;;  %v70_v32 = vrot.slane %v52_v30, %v69_v29  ;;  %v66_v34 = vrot.slane %v52_v30, %v65_v31  ;;  %v680_v51 = vld [vmem:[%s906_s3] sm:$0xff]   ;;  %625 = vmatprep.mubr.msk.bf16.mxu0 %vm745_vm1, %v744_v23  ;;  %v681_v52 = vld [vmem:[%s907_s4 + $0x18] sm:$0xff]   ;;  %v682_v1 = vld [vmem:[%s907_s4 + $0x10] sm:$0xff]  }
  0x27   :  { %611 = vmatprep.subr.bf16.mxu0 %v744_v23  ;;  %v541_v56 = vld [vmem:[%s908_s5 + $0x2] ss:$0 sm:$0xff]  ;;  %v683_v2 = vld [vmem:[%s907_s4 + $0x8] sm:$0xff]   ;;  %v558_v4 = vld [vmem:[%s908_s5 + $0x3] ss:$0 sm:$0xff] }
  0x28   :  { %578 = vmatpush3.bf16.msra.mxu1 %v662_v11  ;;  %v684_v3 = vld [vmem:[%s907_s4] sm:$0xff]  }
  0x29   :  { %579 = vmatprep.subr.bf16.mxu1 %v663_v12 }
  0x2a   :  { %612 = vmatpush3.bf16.msra.mxu0 %v674_v24 }
  0x2b   :  { %613 = vmatprep.subr.bf16.mxu0 %v744_v23 }
  0x2c   :  { %580 = vmatpush3.bf16.msra.mxu1 %v664_v13 }
  0x2d   :  { %581 = vmatprep.subr.bf16.mxu1 %v665_v14  ;;  %v567_v14 = vld [vmem:[%s908_s5 + $0x4] ss:$0 sm:$0xff] }
  0x2e   :  { %614 = vmatpush3.bf16.msra.mxu0 %v675_v25 }
  0x2f   :  { %615 = vmatprep.subr.bf16.mxu0 %v744_v23 }
  0x30   :  { %582 = vmatpush3.bf16.msra.mxu1 %v666_v15 }
  0x31   :  { %583 = vmatprep.subr.bf16.mxu1 %v667_v16 }
  0x32   :  { %616 = vmatpush3.bf16.msra.mxu0 %v676_v26 }
  0x33   :  { %617 = vmatprep.subr.bf16.mxu0 %v744_v23 }
  0x34   :  { %584 = vmatpush3.bf16.msra.mxu1 %v668_v17 }
  0x35   :  { %585 = vmatprep.subr.bf16.mxu1 %v669_v18 }
  0x36   :  { %618 = vmatpush3.bf16.msra.mxu0 %v677_v48 }
  0x37   :  { %619 = vmatprep.subr.bf16.mxu0 %v744_v23 }
  0x38   :  { %586 = vmatpush3.bf16.msra.mxu1 %v670_v19 }
  0x39   :  { %587 = vmatprep.subr.bf16.mxu1 %v671_v20 }
  0x3a   :  { %620 = vmatpush3.bf16.msra.mxu0 %v678_v49 }
  0x3b   :  { %621 = vmatprep.subr.bf16.mxu0 %v744_v23 }
  0x3c   :  { %588 = vmatpush3.bf16.msra.mxu1 %v672_v21 }
  0x3d   :  { %629 = vmatprep.subr.bf16.mxu1 %v744_v23 }
  0x3e   :  { %622 = vmatpush3.bf16.msra.mxu0 %v679_v50 }
  0x3f   :  { %623 = vmatprep.subr.bf16.mxu0 %v744_v23 }
  0x42   :  { %624 = vmatpush3.bf16.msra.mxu0 %v680_v51 }
  0xe5   :  { %v136_v33 = vpop.f32.mrf.mxu0 }
  0xe6   :  { %v137_v39 = vadd.f32 %v136_v33, %v66_v34 }
  0xe7   :  { %v138_v35 = vpop.f32.mrf.mxu0 }
  0xe8   :  { %v139_v36 = vadd.f32 %v138_v35, %v70_v32 }
  0xe9   :  { %v140_v37 = vpop.f32.mrf.mxu0 }
  0xea   :  { %v141_v38 = vadd.f32 %v140_v37, %v66_v34  ;;  %685 = vtanh.f32 %v139_v36 }
  0xeb   :  { %v142_v40 = vpop.f32.mrf.mxu0 }
  0xec   :  { %v143_v41 = vadd.f32 %v142_v40, %v70_v32  ;;  %687 = vtanh.f32 %v141_v38 }
  0xee   :  { %689 = vtanh.f32 %v143_v41 }
  0xef   :  { %691 = vtanh.f32 %v137_v39 }
  0xf7   :  { %v686_v42 = vpop.eup %685 }
  0xf9   :  { %v688_v43 = vpop.eup %687 }
  0xfb   :  { %v690_v44 = vpop.eup %689 }
  0xfc   :  { %v692_v45 = vpop.eup %691  ;;  %v150_v46 = vpack.c.bf16 %v690_v44, %v686_v42 }
  0xfd   :  { %v149_v47 = vpack.c.bf16 %v688_v43, %v692_v45 }
  0xfe   :  { %317 = vmatprep.mubr.bf16.mxu1 %v150_v46 }
  0xff   :  { %318 = vmatmul.mubr.bf16.vlgmr.msra.gmra.mxu1 %v149_v47 }
 0x100   :  { %637 = vmatprep.mubr.msk.bf16.mxu1 %vm745_vm1, %v744_v23  ;;  %630 = vmatpush3.bf16.msra.mxu1 %v681_v52 }
 0x101   :  { %631 = vmatprep.subr.bf16.mxu1 %v744_v23 }
 0x104   :  { %632 = vmatpush3.bf16.msra.mxu1 %v682_v1 }
 0x105   :  { %633 = vmatprep.subr.bf16.mxu1 %v744_v23 }
 0x108   :  { %634 = vmatpush3.bf16.msra.mxu1 %v683_v2 }
 0x109   :  { %635 = vmatprep.subr.bf16.mxu1 %v744_v23 }
 0x10c   :  { %636 = vmatpush3.bf16.msra.mxu1 %v684_v3 }
 0x1bf   :  { %v589_v53 = vpop.f32.mrf.mxu1 }
 0x1c1   :  { %v590_v54 = vpop.f32.mrf.mxu1 }
 0x1c2   :  { %v591_v55 = vadd.f32 %v590_v54, %v589_v53 }
 0x1c3   :  { %v592_v57 = vpop.f32.mrf.mxu1 }
 0x1c4   :  { %v320_v59 = vadd.f32 %v591_v55, %v541_v56 }
 0x1c5   :  { %v593_v58 = vpop.f32.mrf.mxu1 }
 0x1c6   :  { %v594_v60 = vadd.f32 %v593_v58, %v592_v57  ;;  %v326_v62 = vmax.f32 %v320_v59, 0.0 }
 0x1c8   :  { %v323_v61 = vadd.f32 %v594_v60, %v541_v56 }
 0x1ca   :  { %v327_v63 = vmax.f32 %v323_v61, 0.0 }
 0x1cc   :  { %v328_v0 = vpack.c.bf16 %v327_v63, %v326_v62 }
 0x1ce   :  { %626 = vmatmul.mubr.bf16.vlgmr.msra.gmra.mxu0 %v328_v0 }
 0x28e   :  { %v433_v5 = vpop.f32.mrf.mxu0 }
 0x28f   :  { %v434_v7 = vadd.f32 %v558_v4, %v433_v5 }
 0x290   :  { %v627_v6 = vpop.f32.mrf.mxu0 }
 0x291   :  { %v440_v11 = vmax.f32 %v434_v7, 0.0 }
 0x292   :  { %v436_v8 = vpop.f32.mrf.mxu0 }
 0x293   :  { %v437_v9 = vadd.f32 %v558_v4, %v436_v8 }
 0x294   :  { %v628_v10 = vpop.f32.mrf.mxu0 }
 0x295   :  { %v441_v12 = vmax.f32 %v437_v9, 0.0 }
 0x297   :  { %v442_v13 = vpack.c.bf16 %v441_v12, %v440_v11 }
 0x299   :  { %638 = vmatmul.mubr.msk.bf16.vlgmr.msra.gmra.mxu1 %vm481_vm2, %v442_v13 }
 0x359   :  { %v519_v15 = vpop.f32.mrf.mxu1 }
 0x35a   :  { %v520_v16 = vadd.f32 %v567_v14, %v519_v15 }
 0x35b   :  { %v639_v17 = vpop.f32.mrf.mxu1 }
 0x35c   :  { %527 = vst.msk [vmem:[%s909_s6] sm:$0xff] %vm526_vm3, %v520_v16 }
 0x35d   :  { %v522_v18 = vpop.f32.mrf.mxu1 }
 0x35e   :  { %v523_v19 = vadd.f32 %v567_v14, %v522_v18 }
 0x35f   :  { %v640_v20 = vpop.f32.mrf.mxu1 }
 0x360   :  { %528 = vst.msk [vmem:[%s909_s6 + $0x8] sm:$0xff] %vm526_vm3, %v523_v19 }
 0x361   :  { %533 = vsyncpa [#allocation3], 1 }
 0x362   :  { %534 = vsyncpa [#allocation5], 1 }

</bundles_post_ra>
